<compile_context>
chip_gen: v7x
topology: tpu7x:2x2x1
jax: 0.10.0
libtpu: 0.0.40
codegen_flags: <defaults>
</compile_context>

<pallas_src>
import jax
import jax.numpy as jnp
from jax import lax
from jax.experimental import pallas as pl
from jax.experimental.pallas import tpu as pltpu

LN_EPS = 1e-5  # PyTorch nn.LayerNorm default


def _embed_layernorm_kernel(ids_ref, table_ref, gamma_ref, beta_ref, o_ref):
    # ids_ref   : [TILE_N, 3] int32 — columns (tok, passend, mjd), already
    #             offset into the stacked table's row space; padded rows = -1.
    # table_ref : [R_pad, D] f32   (tok ++ passend ++ mjd, zero-padded rows)
    # gamma_ref : [1, D] f32
    # beta_ref  : [1, D] f32
    # o_ref     : [TILE_N, D] f32
    tile_n = ids_ref.shape[0]
    r_pad = table_ref.shape[0]
    d = table_ref.shape[1]

    tok = ids_ref[:, 0:1]
    pse = ids_ref[:, 1:2]
    mjd = ids_ref[:, 2:3]

    # One shared iota; the three offset id ranges are disjoint, so a boolean
    # OR followed by a single cast is exactly the summed one-hot (each row
    # has exactly three 1.0 entries, or zero entries for -1 padded rows).
    iota = lax.broadcasted_iota(jnp.int32, (tile_n, r_pad), 1)
    one_hot = ((tok == iota) | (pse == iota) | (mjd == iota)).astype(jnp.float32)

    # Single MXU matmul gathers + sums the three embedding rows per token.
    emb = jnp.dot(one_hot, table_ref[...],
                  preferred_element_type=jnp.float32)              # [TILE_N, D]

    # Fused LayerNorm over D: one-pass sum / sum-of-squares (biased variance,
    # eps inside rsqrt, matching torch.nn.LayerNorm).  rsqrt -> EUP.
    inv_d = jnp.float32(1.0 / d)
    s1 = jnp.sum(emb, axis=-1, keepdims=True)
    s2 = jnp.sum(emb * emb, axis=-1, keepdims=True)
    mean = s1 * inv_d
    var = s2 * inv_d - mean * mean
    inv = lax.rsqrt(var + LN_EPS)
    o_ref[...] = (emb - mean) * inv * gamma_ref[...] + beta_ref[...]


def prepare_embedding_params(tok_tab, pass_tab, mjd_tab, gamma, beta):
    """One-time parameter prep (do NOT call per forward step).

    Stacks the three embedding tables into one [R_pad, D] f32 table (R_pad a
    multiple of 128, zero-padded) and reshapes gamma/beta to [1, D].
    """
    V, D = tok_tab.shape
    P = pass_tab.shape[0]
    T = mjd_tab.shape[0]
    R = V + P + T
    R_pad = max(128, pl.cdiv(R, 128) * 128)

    table = jnp.zeros((R_pad, D), jnp.float32)
    table = table.at[:V].set(tok_tab.astype(jnp.float32))
    table = table.at[V:V + P].set(pass_tab.astype(jnp.float32))
    table = table.at[V + P:V + P + T].set(mjd_tab.astype(jnp.float32))

    gamma2 = gamma.reshape(1, D).astype(jnp.float32)
    beta2 = beta.reshape(1, D).astype(jnp.float32)
    return table, gamma2, beta2, (V, P, T)


def embedding_forward(x, mjd, passend, table, gamma2, beta2, sizes, *,
                      tile_n=2048):
    """Forward pass. `table`, `gamma2`, `beta2`, `sizes` come from
    prepare_embedding_params()."""
    B, S = x.shape
    V, P, T = sizes
    R_pad, D = table.shape
    N = B * S

    # Tile size: multiple of 8, capped at the (padded) token count.
    tile_n = min(tile_n, max(8, ((N + 7) // 8) * 8))
    n_pad = pl.cdiv(N, tile_n) * tile_n

    # Merged id tensor [n_pad, 3]; ids offset into the stacked row space.
    # Padding uses -1 so padded rows match no table row (zero embedding).
    ids = jnp.stack([
        x.reshape(N).astype(jnp.int32),
        passend.reshape(N).astype(jnp.int32) + V,
        mjd.reshape(N).astype(jnp.int32) + V + P,
    ], axis=-1)
    ids = jnp.pad(ids, ((0, n_pad - N), (0, 0)), constant_values=-1)

    grid = (n_pad // tile_n,)

    # ids / output are pipelined over the token grid axis; table and
    # gamma/beta use constant-index BlockSpecs so they stay VMEM-resident.
    id_spec = pl.BlockSpec((tile_n, 3), lambda i: (i, 0))
    table_spec = pl.BlockSpec((R_pad, D), lambda i: (0, 0))
    vec_spec = pl.BlockSpec((1, D), lambda i: (0, 0))
    out_spec = pl.BlockSpec((tile_n, D), lambda i: (i, 0))   # lane-dense if D%128==0

    cost = pl.CostEstimate(
        flops=2 * n_pad * R_pad * D + 8 * n_pad * D,
        transcendentals=n_pad,
        bytes_accessed=(n_pad * 3 * 4            # merged ids
                        + n_pad * D * 4          # output
                        + R_pad * D * 4          # stacked table
                        + 2 * D * 4),            # gamma, beta
    )

    out = pl.pallas_call(
        _embed_layernorm_kernel,
        out_shape=jax.ShapeDtypeStruct((n_pad, D), jnp.float32),
        grid=grid,
        in_specs=[id_spec, table_spec, vec_spec, vec_spec],
        out_specs=out_spec,
        compiler_params=pltpu.CompilerParams(
            dimension_semantics=("parallel",),
            vmem_limit_bytes=48 * 1024 * 1024,
        ),
        cost_estimate=cost,
    )(ids, table, gamma2, beta2)

    return out[:N].reshape(B, S, D)


def reference_forward(x, mjd, passend, tok_tab, mjd_tab, pass_tab, gamma, beta):
    emb = tok_tab[x] + pass_tab[passend] + mjd_tab[mjd]
    mean = jnp.mean(emb, axis=-1, keepdims=True)
    var = jnp.mean((emb - mean) ** 2, axis=-1, keepdims=True)
    return (emb - mean) * lax.rsqrt(var + LN_EPS) * gamma + beta


if __name__ == "__main__":
    # Small, module-consistent hyperparameters (D kept a multiple of 128 so
    # the output stores are lane-dense).
    vocab_size = 32
    n_passend = 4
    time_range = 64
    d_model = 128
    B, S = 2, 8

    key = jax.random.PRNGKey(0)
    k1, k2, k3, k4, k5, k6 = jax.random.split(key, 6)

    # Deterministic parameter init (nn.Embedding ~ N(0,1); LayerNorm ones/zeros)
    tok_tab = jax.random.normal(k1, (vocab_size, d_model), jnp.float32)
    pass_tab = jax.random.normal(k2, (n_passend, d_model), jnp.float32)
    mjd_tab = jax.random.normal(k3, (time_range, d_model), jnp.float32)
    gamma = jnp.ones((d_model,), jnp.float32)
    beta = jnp.zeros((d_model,), jnp.float32)

    # Deterministic example inputs
    x = jax.random.randint(k4, (B, S), 0, vocab_size, jnp.int32)
    passend = jax.random.randint(k5, (B, S), 0, n_passend, jnp.int32)
    mjd = jax.random.randint(k6, (B, S), 0, time_range, jnp.int32)

    # One-time parameter prep (stacked table + gamma/beta layout).
    table, gamma2, beta2, sizes = prepare_embedding_params(
        tok_tab, pass_tab, mjd_tab, gamma, beta)
    table = jax.block_until_ready(table)

    out = embedding_forward(x, mjd, passend, table, gamma2, beta2, sizes)
    out = jax.block_until_ready(out)

    ref = reference_forward(x, mjd, passend, tok_tab, mjd_tab, pass_tab,
                            gamma, beta)
    assert out.shape == (B, S, d_model)
    assert jnp.allclose(out, ref, atol=1e-4, rtol=1e-4)

    print("KERNEL_OK")
</pallas_src>

<mosaic_0001>
module attributes {stable_mosaic.version = 11 : i64} {
  func.func @_embed_layernorm_kernel(%arg0: i32, %arg1: memref<16x3xi32, #tpu.memory_space<vmem>>, %arg2: memref<128x128xf32, #tpu.memory_space<vmem>>, %arg3: memref<1x128xf32, #tpu.memory_space<vmem>>, %arg4: memref<1x128xf32, #tpu.memory_space<vmem>>, %arg5: memref<16x128xf32, #tpu.memory_space<vmem>>) attributes {dimension_semantics = [#tpu.dimension_semantics<parallel>], iteration_bounds = array<i64: 1>, scalar_prefetch = 0 : i64, scratch_operands = 0 : i64, tpu.core_type = #tpu.core_type<tc>, window_params = [{transform_indices = @transform_0, window_bounds = array<i64: 16, 3>}, {pipeline_mode = #tpu.pipeline_mode<synchronous>, transform_indices = @transform_1, window_bounds = array<i64: 128, 128>}, {pipeline_mode = #tpu.pipeline_mode<synchronous>, transform_indices = @transform_2, window_bounds = array<i64: 1, 128>}, {pipeline_mode = #tpu.pipeline_mode<synchronous>, transform_indices = @transform_3, window_bounds = array<i64: 1, 128>}, {transform_indices = @transform_4, window_bounds = array<i64: 16, 128>}]} {
    %c0 = arith.constant 0 : index
    %c0_0 = arith.constant 0 : index
    %0 = vector.load %arg1[%c0, %c0_0] : memref<16x3xi32, #tpu.memory_space<vmem>>, vector<16x1xi32>
    %c0_1 = arith.constant 0 : index
    %c1 = arith.constant 1 : index
    %1 = vector.load %arg1[%c0_1, %c1] : memref<16x3xi32, #tpu.memory_space<vmem>>, vector<16x1xi32>
    %c0_2 = arith.constant 0 : index
    %c2 = arith.constant 2 : index
    %2 = vector.load %arg1[%c0_2, %c2] : memref<16x3xi32, #tpu.memory_space<vmem>>, vector<16x1xi32>
    %3 = tpu.iota {dimensions = array<i32: 1>} : vector<16x128xi32>
    %4 = vector.broadcast %0 : vector<16x1xi32> to vector<16x128xi32>
    %5 = arith.cmpi eq, %4, %3 : vector<16x128xi32>
    %6 = vector.broadcast %1 : vector<16x1xi32> to vector<16x128xi32>
    %7 = arith.cmpi eq, %6, %3 : vector<16x128xi32>
    %8 = arith.ori %5, %7 : vector<16x128xi1>
    %9 = vector.broadcast %2 : vector<16x1xi32> to vector<16x128xi32>
    %10 = arith.cmpi eq, %9, %3 : vector<16x128xi32>
    %11 = arith.ori %8, %10 : vector<16x128xi1>
    %12 = arith.extui %11 : vector<16x128xi1> to vector<16x128xi32>
    %13 = arith.sitofp %12 : vector<16x128xi32> to vector<16x128xf32>
    %c0_3 = arith.constant 0 : index
    %c0_4 = arith.constant 0 : index
    %14 = vector.load %arg2[%c0_3, %c0_4] : memref<128x128xf32, #tpu.memory_space<vmem>>, vector<128x128xf32>
    %cst = arith.constant dense<0.000000e+00> : vector<16x128xf32>
    %15 = tpu.matmul %13, %14, %cst {dimension_numbers = #tpu.dot_dimension_numbers<[1], [0], [0], [1], [0, 0, 1, 1], [], []>} : vector<16x128xf32>, vector<128x128xf32>, vector<16x128xf32> -> vector<16x128xf32>
    %cst_5 = arith.constant dense<0.000000e+00> : vector<16xf32>
    %16 = vector.multi_reduction <add>, %15, %cst_5 [1] : vector<16x128xf32> to vector<16xf32>
    %17 = vector.shape_cast %16 : vector<16xf32> to vector<16x1xf32>
    %18 = arith.mulf %15, %15 : vector<16x128xf32>
    %cst_6 = arith.constant dense<0.000000e+00> : vector<16xf32>
    %19 = vector.multi_reduction <add>, %18, %cst_6 [1] : vector<16x128xf32> to vector<16xf32>
    %20 = vector.shape_cast %19 : vector<16xf32> to vector<16x1xf32>
    %cst_7 = arith.constant 7.812500e-03 : f32
    %21 = vector.broadcast %cst_7 : f32 to vector<16x1xf32>
    %22 = arith.mulf %17, %21 : vector<16x1xf32>
    %cst_8 = arith.constant 7.812500e-03 : f32
    %23 = vector.broadcast %cst_8 : f32 to vector<16x1xf32>
    %24 = arith.mulf %20, %23 : vector<16x1xf32>
    %25 = arith.mulf %22, %22 : vector<16x1xf32>
    %26 = arith.subf %24, %25 : vector<16x1xf32>
    %cst_9 = arith.constant 9.99999974E-6 : f32
    %27 = vector.broadcast %cst_9 : f32 to vector<16x1xf32>
    %28 = arith.addf %26, %27 : vector<16x1xf32>
    %29 = math.rsqrt %28 : vector<16x1xf32>
    %30 = vector.broadcast %22 : vector<16x1xf32> to vector<16x128xf32>
    %31 = arith.subf %15, %30 : vector<16x128xf32>
    %32 = vector.broadcast %29 : vector<16x1xf32> to vector<16x128xf32>
    %33 = arith.mulf %31, %32 : vector<16x128xf32>
    %c0_10 = arith.constant 0 : index
    %c0_11 = arith.constant 0 : index
    %34 = vector.load %arg3[%c0_10, %c0_11] : memref<1x128xf32, #tpu.memory_space<vmem>>, vector<1x128xf32>
    %35 = vector.broadcast %34 : vector<1x128xf32> to vector<16x128xf32>
    %36 = arith.mulf %33, %35 : vector<16x128xf32>
    %c0_12 = arith.constant 0 : index
    %c0_13 = arith.constant 0 : index
    %37 = vector.load %arg4[%c0_12, %c0_13] : memref<1x128xf32, #tpu.memory_space<vmem>>, vector<1x128xf32>
    %38 = vector.broadcast %37 : vector<1x128xf32> to vector<16x128xf32>
    %39 = arith.addf %36, %38 : vector<16x128xf32>
    %c0_14 = arith.constant 0 : index
    %c0_15 = arith.constant 0 : index
    %40 = vector.load %arg5[%c0_14, %c0_15] : memref<16x128xf32, #tpu.memory_space<vmem>>, vector<16x128xf32>
    tpu.vector_store %arg5[%c0_14, %c0_15], %39 {strides = array<i32>} : memref<16x128xf32, #tpu.memory_space<vmem>>, vector<16x128xf32>,
    return
  }
  func.func @transform_0(%arg0: i32) -> (i32, i32) {
    %c0_i32 = arith.constant 0 : i32
    %c0_i32_0 = arith.constant 0 : i32
    return %arg0, %c0_i32 : i32, i32
  }
  func.func @transform_1(%arg0: i32) -> (i32, i32) {
    %c0_i32 = arith.constant 0 : i32
    %c0_i32_0 = arith.constant 0 : i32
    %c0_i32_1 = arith.constant 0 : i32
    return %c0_i32, %c0_i32_0 : i32, i32
  }
  func.func @transform_2(%arg0: i32) -> (i32, i32) {
    %c0_i32 = arith.constant 0 : i32
    %c0_i32_0 = arith.constant 0 : i32
    %c0_i32_1 = arith.constant 0 : i32
    return %c0_i32, %c0_i32_0 : i32, i32
  }
  func.func @transform_3(%arg0: i32) -> (i32, i32) {
    %c0_i32 = arith.constant 0 : i32
    %c0_i32_0 = arith.constant 0 : i32
    %c0_i32_1 = arith.constant 0 : i32
    return %c0_i32, %c0_i32_0 : i32, i32
  }
  func.func @transform_4(%arg0: i32) -> (i32, i32) {
    %c0_i32 = arith.constant 0 : i32
    %c0_i32_0 = arith.constant 0 : i32
    return %arg0, %c0_i32 : i32, i32
  }
}

</mosaic_0001>

<bundles_post_ra>
// kernel: tpu_custom_call.1
= control target key start
LH: loop header
LB: loop body
LE: loop exit
PB: predicated region body
PF: predicated region fallthrough
CT: control target
= control target key end

     0   :  { %9 = vsyncpa [#allocation3], 0  ;;  %s454_s0 = inlined_call_operand.vmem [shape: s32[16,3], index: 0, kind: input, shape index: {}]   ;;  %s455_s1 = inlined_call_operand.hbm [shape: f32[128,128], index: 1, kind: input, shape index: {}]   ;;  %s456_s2 = inlined_call_operand.vmem [shape: f32[1,128], index: 2, kind: input, shape index: {}]   ;;  %s457_s3 = inlined_call_operand.vmem [shape: f32[1,128], index: 3, kind: input, shape index: {}]   ;;  %s458_s4 = inlined_call_operand.hbm [shape: f32[16,128], index: 4, kind: output, shape index: {}]  }
   0x1   :  { %10 = vsyncpa [#allocation4], 0  ;;  %s379_s15 = smov [#allocation2]   ;;  %s331_s19 = scalar_lea.hbm %s455_s1, 2048 }
   0x2   :  { %s18_s16 = sshll.u32 %s379_s15, 4  ;;  %p332_p0 = scmp.ne.s32.totalorder %s455_s1, %s331_s19  ;;  %s19_s16 = int_to_ptr.vmem [resolvable:$true] %s18_s16 }
   0x3   :  { %p335_p1 = scmp.lt.u32.totalorder %s331_s19, %s455_s1 }
   0x5   :  { %p337_p2 = pnand %p335_p1, %p332_p0 }
   0x7   :  { %340 = shalt.err (!%p337_p2)
}
   0x8   :  { %s341_s24 = scalar_lea.vmem %s19_s16, 2048  ;;  %p346_p4 = scmp.lt.s32.totalorder %s19_s16, %s19_s16 }
   0x9   :  { %p342_p3 = scmp.ne.s32.totalorder %s19_s16, %s341_s24  ;;  %p347_p5 = scmp.lt.s32.totalorder %s341_s24, %s341_s24 }
   0xb   :  { %p348_p6 = por %p347_p5, %p346_p4 }
   0xd   :  { %p349_p7 = pnand %p348_p6, %p342_p3 }
   0xf   :  { %352 = shalt.err (!%p349_p7)
}
  0x10   :  { %s380_s25 = smov 128   ;;  %s381_s26 = smov 8  }
  0x11   :  { %24 = dma.hbm_to_vmem [thread:$0]  %s455_s1, 2048, %s19_s16, [#allocation3], %s380_s25, %s380_s25, %s381_s26  }
  0x12   :  { %375 = dma.done.wait [#allocation3], 2048  }
  0x13   :  { %376 = vsyncadd [#allocation3], 4294965248  ;;  %v382_v0 = vmov 0   ;;  %v33_v1 = vld [vmem:[%s454_s0 + $0x8] sm:$0xff]  ;;  %v32_v2 = vld [vmem:[%s454_s0] sm:$0xff]  ;;  %v383_v9 = vmov 1   ;;  %v34_v31 = vlaneseq }
  0x14   :  { %323 = vset.pattern.permute.xlu1 %v382_v0  ;;  %321 = vset.pattern.permute.xlu0 %v382_v0  ;;  %v68_v3 = vld [vmem:[#allocation2] sm:$0xff]  ;;  %v69_v4 = vld [vmem:[#allocation2 + $0x8] sm:$0xff]  ;;  %v70_v5 = vld [vmem:[#allocation2 + $0x10] sm:$0xff]  ;;  %v384_v13 = vmov 2   ;;  %v385_v37 = vmov 1.0   ;;  %s386_s9 = smov [#allocation5]  }
  0x15   :  { %40 = vperm.xlu1 %323, %v33_v1   ;;  %37 = vperm.xlu0 %321, %v32_v2   ;;  %v71_v6 = vld [vmem:[#allocation2 + $0x18] sm:$0xff]  ;;  %v281_v7 = vpack.c.bf16 %v69_v4, %v68_v3  ;;  %v72_v10 = vld [vmem:[#allocation2 + $0x20] sm:$0xff]  ;;  %v73_v11 = vld [vmem:[#allocation2 + $0x28] sm:$0xff]  ;;  %v35_v32 = vand.u32 127, %v34_v31  ;;  %s210_s10 = sshll.u32 %s386_s9, 4  ;;  %s211_s10 = int_to_ptr.vmem [resolvable:$true] %s210_s10 }
  0x16   :  { %v285_v8 = vpack.c.bf16 %v71_v6, %v70_v5  ;;  %v289_v12 = vpack.c.bf16 %v73_v11, %v72_v10  ;;  %v74_v14 = vld [vmem:[#allocation2 + $0x30] sm:$0xff]  ;;  %v75_v15 = vld [vmem:[#allocation2 + $0x38] sm:$0xff]  ;;  %v76_v17 = vld [vmem:[#allocation2 + $0x40] sm:$0xff]  ;;  %s353_s11 = scalar_lea.vmem %s211_s10, 256  ;;  %p358_p9 = scmp.lt.s32.totalorder %s211_s10, %s211_s10 }
  0x17   :  { %282 = vmatprep.subr.bf16.mxu0 %v281_v7  ;;  %v293_v16 = vpack.c.bf16 %v75_v15, %v74_v14  ;;  %v77_v18 = vld [vmem:[#allocation2 + $0x48] sm:$0xff]  ;;  %v78_v20 = vld [vmem:[#allocation2 + $0x50] sm:$0xff]  ;;  %v79_v21 = vld [vmem:[#allocation2 + $0x58] sm:$0xff]  ;;  %p354_p8 = scmp.ne.s32.totalorder %s211_s10, %s353_s11  ;;  %p359_p10 = scmp.lt.s32.totalorder %s353_s11, %s353_s11 }
  0x18   :  { %284 = vmatpush3.bf16.msra.mxu0 %v281_v7  ;;  %v297_v19 = vpack.c.bf16 %v77_v18, %v76_v17  ;;  %v301_v22 = vpack.c.bf16 %v79_v21, %v78_v20  ;;  %v80_v23 = vld [vmem:[#allocation2 + $0x60] sm:$0xff]  ;;  %v81_v24 = vld [vmem:[#allocation2 + $0x68] sm:$0xff]  ;;  %v82_v26 = vld [vmem:[#allocation2 + $0x70] sm:$0xff] }
  0x19   :  { %324 = vset.pattern.permute.xlu1 %v383_v9  ;;  %322 = vset.pattern.permute.xlu0 %v383_v9  ;;  %v305_v25 = vpack.c.bf16 %v81_v24, %v80_v23  ;;  %v83_v27 = vld [vmem:[#allocation2 + $0x78] sm:$0xff]  ;;  %v226_v59 = vld [vmem:[%s456_s2] ss:$0 sm:$0xff]  ;;  %p360_p11 = por %p359_p10, %p358_p9 }
  0x1a   :  { %48 = vperm.xlu1 %324, %v33_v1   ;;  %45 = vperm.xlu0 %322, %v32_v2   ;;  %v309_v28 = vpack.c.bf16 %v83_v27, %v82_v26  ;;  %v227_v63 = vld [vmem:[%s457_s3] ss:$0 sm:$0xff] }
  0x1b   :  { %286 = vmatprep.subr.bf16.mxu0 %v285_v8  ;;  %p361_p12 = pnand %p360_p11, %p354_p8 }
  0x1c   :  { %288 = vmatpush3.bf16.msra.mxu0 %v285_v8 }
  0x1d   :  { %290 = vmatprep.subr.bf16.mxu0 %v289_v12 }
  0x1e   :  { %325 = vset.pattern.permute.xlu1 %v384_v13  ;;  %326 = vset.pattern.permute.xlu0 %v384_v13 }
  0x1f   :  { %55 = vperm.xlu1 %325, %v32_v2   ;;  %58 = vperm.xlu0 %326, %v33_v1  }
  0x20   :  { %292 = vmatpush3.bf16.msra.mxu0 %v289_v12 }
  0x21   :  { %294 = vmatprep.subr.bf16.mxu0 %v293_v16 }
  0x24   :  { %296 = vmatpush3.bf16.msra.mxu0 %v293_v16 }
  0x25   :  { %298 = vmatprep.subr.bf16.mxu0 %v297_v19 }
  0x28   :  { %300 = vmatpush3.bf16.msra.mxu0 %v297_v19 }
  0x29   :  { %302 = vmatprep.subr.bf16.mxu0 %v301_v22 }
  0x2c   :  { %304 = vmatpush3.bf16.msra.mxu0 %v301_v22 }
  0x2d   :  { %306 = vmatprep.subr.bf16.mxu0 %v305_v25 }
  0x30   :  { %308 = vmatpush3.bf16.msra.mxu0 %v305_v25 }
  0x31   :  { %310 = vmatprep.subr.bf16.mxu0 %v309_v28 }
  0x34   :  { %312 = vmatpush3.bf16.msra.mxu0 %v309_v28 }
  0x94   :  { %v41_v29 = vpop.permute.xlu1 %40  ;;  %v38_v30 = vpop.permute.xlu0 %37 }
  0x95   :  { %vm43_vm2 = vcmp.eq.s32.totalorder %v41_v29, %v35_v32  ;;  %vm42_vm3 = vcmp.eq.s32.totalorder %v38_v30, %v35_v32 }
  0x99   :  { %v49_v33 = vpop.permute.xlu1 %48  ;;  %v46_v34 = vpop.permute.xlu0 %45 }
  0x9a   :  { %vm51_vm0 = vcmp.eq.s32.totalorder %v49_v33, %v35_v32  ;;  %vm50_vm1 = vcmp.eq.s32.totalorder %v46_v34, %v35_v32 }
  0x9b   :  { %vm53_vm4 = vmor %vm43_vm2, %vm51_vm0 }
  0x9c   :  { %vm52_vm7 = vmor %vm42_vm3, %vm50_vm1 }
  0x9e   :  { %v56_v35 = vpop.permute.xlu1 %55  ;;  %v59_v36 = vpop.permute.xlu0 %58 }
  0x9f   :  { %vm60_vm5 = vcmp.eq.s32.totalorder %v56_v35, %v35_v32  ;;  %vm61_vm6 = vcmp.eq.s32.totalorder %v59_v36, %v35_v32 }
  0xa0   :  { %vm63_vm8 = vmor %vm53_vm4, %vm61_vm6 }
  0xa1   :  { %vm62_vm9 = vmor %vm52_vm7, %vm60_vm5 }
  0xa2   :  { %278 = vmatprep.mubr.msk.f32.mxu0 %vm62_vm9, %v385_v37 }
  0xa3   :  { %279 = vmatmul.mubr.msk.f32.vlgmr.msra.gmra.mrb[0].mxu0 %vm63_vm8, %v385_v37 }
 0x176   :  { %v280_v38 = vpop.f32.mrb[0].mxu0 }
 0x177   :  { %161 = vadd.xlane.f32.xlu0 %v280_v38  ;;  %v150_v39 = vpop.f32.mrb[1].mxu0  ;;  %v164_v40 = vmul.f32 %v280_v38, %v280_v38 }
 0x178   :  { %159 = vadd.xlane.f32.xlu1 %v150_v39  ;;  %v163_v41 = vmul.f32 %v150_v39, %v150_v39 }
 0x17b   :  { %167 = vadd.xlane.f32.xlu0 %v164_v40 }
 0x17c   :  { %165 = vadd.xlane.f32.xlu1 %v163_v41 }
 0x204   :  { %v162_v42 = vpop.xlane.xlu0 %161 }
 0x205   :  { %v170_v43 = vmul.f32 0.0078125, %v162_v42  ;;  %v160_v44 = vpop.xlane.xlu1 %159 }
 0x206   :  { %v169_v45 = vmul.f32 0.0078125, %v160_v44 }
 0x207   :  { %v174_v47 = vmul.f32 %v170_v43, %v170_v43  ;;  %v182_v56 = vsub.f32 %v280_v38, %v170_v43 }
 0x208   :  { %v168_v46 = vpop.xlane.xlu0 %167  ;;  %v173_v50 = vmul.f32 %v169_v45, %v169_v45  ;;  %v181_v58 = vsub.f32 %v150_v39, %v169_v45 }
 0x209   :  { %v172_v48 = vmul.f32 0.0078125, %v168_v46  ;;  %v166_v49 = vpop.xlane.xlu1 %165 }
 0x20a   :  { %v171_v51 = vmul.f32 0.0078125, %v166_v49 }
 0x20b   :  { %v176_v52 = vsub.f32 %v172_v48, %v174_v47 }
 0x20c   :  { %v175_v53 = vsub.f32 %v171_v51, %v173_v50 }
 0x20d   :  { %v178_v54 = vadd.f32 1e-05, %v176_v52 }
 0x20e   :  { %v177_v55 = vadd.f32 1e-05, %v175_v53 }
 0x20f   :  { %327 = vrsqrt.f32 %v178_v54 }
 0x210   :  { %329 = vrsqrt.f32 %v177_v55 }
 0x219   :  { %v328_v57 = vpop.eup %327 }
 0x21a   :  { %v330_v60 = vpop.eup %329  ;;  %v184_v61 = vmul.f32 %v328_v57, %v182_v56 }
 0x21b   :  { %v183_v62 = vmul.f32 %v330_v60, %v181_v58 }
 0x21c   :  { %v193_v0 = vmul.f32 %v226_v59, %v184_v61 }
 0x21d   :  { %v192_v1 = vmul.f32 %v226_v59, %v183_v62 }
 0x21e   :  { %v202_v2 = vadd.f32 %v227_v63, %v193_v0 }
 0x21f   :  { %v201_v3 = vadd.f32 %v227_v63, %v192_v1 }
 0x220   :  { %204 = vst [vmem:[#allocation5 + $0x8] sm:$0xff] %v202_v2 }
 0x221   :  { %203 = vst [vmem:[#allocation5] sm:$0xff] %v201_v3 }
 0x222   :  { %364 = shalt.err (!%p361_p12)
}
 0x223   :  { %s365_s3 = scalar_lea.hbm %s458_s4, 256 }
 0x224   :  { %p366_p13 = scmp.ne.s32.totalorder %s458_s4, %s365_s3  ;;  %p369_p0 = scmp.lt.u32.totalorder %s365_s3, %s458_s4 }
 0x226   :  { %p371_p1 = pnand %p369_p0, %p366_p13 }
 0x228   :  { %374 = shalt.err (!%p371_p1)
}
 0x229   :  { %216 = dma.vmem_to_hbm [thread:$0]  %s211_s10, 256, %s458_s4, [#allocation4], %s380_s25, %s380_s25, %s381_s26  }
 0x22a   :  { %377 = dma.done.wait [#allocation4], 256  }
 0x22b   :  { %378 = vsyncadd [#allocation4], 4294967040 }
 0x22c   :  { %220 = vsyncpa [#allocation3], 1 }
 0x22d   :  { %221 = vsyncpa [#allocation4], 1 }

</bundles_post_ra>
